<compile_context>
chip_gen: v5e
topology: v5e:2x2
jax: 0.10.0
libtpu: 0.0.40
codegen_flags: <defaults>
</compile_context>

<pallas_src>
import jax
import jax.numpy as jnp
from jax.experimental import pallas as pl
from jax.experimental.pallas import tpu as pltpu

Z_DIM = 50          # input_dim (matches z_dim in the PyTorch script)
HIDDEN = 128
OUT_DIM = 64        # output_dim (e.g. a flattened 8x8 image)

Z_PAD = 64          # padded K dim for layer 1 (zero-padded; exact no-op numerically)
OUT_PAD = 128       # lane-dense output width (sliced back to OUT_DIM outside)
TB_MAX = 256        # batch-tile rows per grid step


def _round_up(x, m):
    return ((x + m - 1) // m) * m


def generator_kernel(z_ref, w1_ref, b1_ref, w2_ref, b2_ref, w3_ref, b3_ref, out_ref):
    # z_ref: (TB, Z_PAD) f32; wN_ref: (in, out) bf16 (VMEM-resident);
    # bN_ref: (1, out) f32; out_ref: (TB, OUT_PAD) f32.
    x = z_ref[...].astype(jnp.bfloat16)                         # bf16 at MXU input only

    h1 = jnp.dot(x, w1_ref[...], preferred_element_type=jnp.float32) + b1_ref[...]
    h1 = jnp.maximum(h1, 0.0)                                   # ReLU (f32 on VPU)

    h2 = jnp.dot(h1.astype(jnp.bfloat16), w2_ref[...],
                 preferred_element_type=jnp.float32) + b2_ref[...]
    h2 = jnp.maximum(h2, 0.0)                                   # ReLU

    h3 = jnp.dot(h2.astype(jnp.bfloat16), w3_ref[...],
                 preferred_element_type=jnp.float32) + b3_ref[...]
    out_ref[...] = jnp.tanh(h3).astype(out_ref.dtype)           # Tanh (f32 on EUP)


def _prepare_params(params):
    """Pad to MXU/lane-friendly shapes and cast weights to bf16 (f32 accumulation in-kernel)."""
    w1 = jnp.zeros((Z_PAD, HIDDEN), jnp.float32).at[:Z_DIM, :].set(params["w1"])
    w3 = jnp.zeros((HIDDEN, OUT_PAD), jnp.float32).at[:, :OUT_DIM].set(params["w3"])
    b3 = jnp.zeros((1, OUT_PAD), jnp.float32).at[:, :OUT_DIM].set(params["b3"])
    return (w1.astype(jnp.bfloat16), params["b1"],
            params["w2"].astype(jnp.bfloat16), params["b2"],
            w3.astype(jnp.bfloat16), b3)


@jax.jit
def generator_forward(z, params):
    """z: (B, Z_DIM) float32. params: dict of (w1,b1,w2,b2,w3,b3). Returns (B, OUT_DIM) f32."""
    w1, b1, w2, b2, w3, b3 = _prepare_params(params)

    B = z.shape[0]
    tb = min(TB_MAX, _round_up(B, 8))        # small batches: one 8-row-aligned tile
    b_pad = _round_up(B, tb)
    nb = b_pad // tb

    # Zero-pad batch rows (sliced off afterwards) and K columns (contribute nothing).
    z_pad = jnp.zeros((b_pad, Z_PAD), jnp.float32).at[:B, :Z_DIM].set(z)

    def resident(shape):
        # Same block for every grid step -> weight/bias stays in VMEM, no re-DMA.
        return pl.BlockSpec(shape, lambda i: (0, 0))

    out_padded = pl.pallas_call(
        generator_kernel,
        out_shape=jax.ShapeDtypeStruct((b_pad, OUT_PAD), jnp.float32),
        grid=(nb,),
        in_specs=[
            pl.BlockSpec((tb, Z_PAD), lambda i: (i, 0)),   # streamed per batch tile
            resident(w1.shape), resident(b1.shape),
            resident(w2.shape), resident(b2.shape),
            resident(w3.shape), resident(b3.shape),
        ],
        out_specs=pl.BlockSpec((tb, OUT_PAD), lambda i: (i, 0)),
        compiler_params=pltpu.CompilerParams(
            dimension_semantics=("parallel",)),            # batch tiles independent (megacore)
    )(z_pad, w1, b1, w2, b2, w3, b3)

    return out_padded[:B, :OUT_DIM]


def init_params(key):
    """Deterministic init mimicking PyTorch nn.Linear default (uniform +/- 1/sqrt(fan_in)).
    Weights are stored already transposed as (in, out)."""
    def linear(key, fan_in, fan_out):
        kw, kb = jax.random.split(key)
        bound = 1.0 / jnp.sqrt(fan_in)
        w = jax.random.uniform(kw, (fan_in, fan_out), jnp.float32, -bound, bound)
        b = jax.random.uniform(kb, (1, fan_out), jnp.float32, -bound, bound)
        return w, b

    k1, k2, k3 = jax.random.split(key, 3)
    w1, b1 = linear(k1, Z_DIM, HIDDEN)
    w2, b2 = linear(k2, HIDDEN, HIDDEN)
    w3, b3 = linear(k3, HIDDEN, OUT_DIM)
    return dict(w1=w1, b1=b1, w2=w2, b2=b2, w3=w3, b3=b3)


def reference_forward_bf16(z, params):
    """Matches the kernel's numerics: bf16 weights/activations at matmul inputs, f32 acc."""
    w1 = params["w1"].astype(jnp.bfloat16)
    w2 = params["w2"].astype(jnp.bfloat16)
    w3 = params["w3"].astype(jnp.bfloat16)
    h1 = jnp.maximum(jnp.dot(z.astype(jnp.bfloat16), w1,
                             preferred_element_type=jnp.float32) + params["b1"], 0.0)
    h2 = jnp.maximum(jnp.dot(h1.astype(jnp.bfloat16), w2,
                             preferred_element_type=jnp.float32) + params["b2"], 0.0)
    return jnp.tanh(jnp.dot(h2.astype(jnp.bfloat16), w3,
                            preferred_element_type=jnp.float32) + params["b3"])


def reference_forward_f32(z, params):
    h1 = jnp.maximum(z @ params["w1"] + params["b1"], 0.0)
    h2 = jnp.maximum(h1 @ params["w2"] + params["b2"], 0.0)
    return jnp.tanh(h2 @ params["w3"] + params["b3"])


if __name__ == "__main__":
    key = jax.random.PRNGKey(0)
    k_z, k_p = jax.random.split(key)

    batch = 8
    z = jax.random.normal(k_z, (batch, Z_DIM), jnp.float32)
    params = init_params(k_p)

    out = jax.block_until_ready(generator_forward(z, params))

    ref_bf16 = reference_forward_bf16(z, params)
    ref_f32 = reference_forward_f32(z, params)

    assert out.shape == (batch, OUT_DIM)
    assert jnp.allclose(out, ref_bf16, atol=2e-3, rtol=2e-3), "mismatch vs bf16-matched reference"
    assert jnp.allclose(out, ref_f32, atol=5e-2), "mismatch vs f32 reference"

    print("KERNEL_OK")
</pallas_src>

<mosaic_0001>
module attributes {stable_mosaic.version = 11 : i64} {
  func.func @generator_kernel(%arg0: i32, %arg1: memref<8x64xf32, #tpu.memory_space<vmem>>, %arg2: memref<64x128xbf16, #tpu.memory_space<vmem>>, %arg3: memref<1x128xf32, #tpu.memory_space<vmem>>, %arg4: memref<128x128xbf16, #tpu.memory_space<vmem>>, %arg5: memref<1x128xf32, #tpu.memory_space<vmem>>, %arg6: memref<128x128xbf16, #tpu.memory_space<vmem>>, %arg7: memref<1x128xf32, #tpu.memory_space<vmem>>, %arg8: memref<8x128xf32, #tpu.memory_space<vmem>>) attributes {dimension_semantics = [#tpu.dimension_semantics<parallel>], iteration_bounds = array<i64: 1>, scalar_prefetch = 0 : i64, scratch_operands = 0 : i64, tpu.core_type = #tpu.core_type<tc>, window_params = [{transform_indices = @transform_0, window_bounds = array<i64: 8, 64>}, {pipeline_mode = #tpu.pipeline_mode<synchronous>, transform_indices = @transform_1, window_bounds = array<i64: 64, 128>}, {pipeline_mode = #tpu.pipeline_mode<synchronous>, transform_indices = @transform_2, window_bounds = array<i64: 1, 128>}, {pipeline_mode = #tpu.pipeline_mode<synchronous>, transform_indices = @transform_3, window_bounds = array<i64: 128, 128>}, {pipeline_mode = #tpu.pipeline_mode<synchronous>, transform_indices = @transform_4, window_bounds = array<i64: 1, 128>}, {pipeline_mode = #tpu.pipeline_mode<synchronous>, transform_indices = @transform_5, window_bounds = array<i64: 128, 128>}, {pipeline_mode = #tpu.pipeline_mode<synchronous>, transform_indices = @transform_6, window_bounds = array<i64: 1, 128>}, {transform_indices = @transform_7, window_bounds = array<i64: 8, 128>}]} {
    %c0 = arith.constant 0 : index
    %c0_0 = arith.constant 0 : index
    %0 = vector.load %arg1[%c0, %c0_0] : memref<8x64xf32, #tpu.memory_space<vmem>>, vector<8x64xf32>
    %1 = arith.truncf %0 : vector<8x64xf32> to vector<8x64xbf16>
    %c0_1 = arith.constant 0 : index
    %c0_2 = arith.constant 0 : index
    %2 = vector.load %arg2[%c0_1, %c0_2] : memref<64x128xbf16, #tpu.memory_space<vmem>>, vector<64x128xbf16>
    %cst = arith.constant dense<0.000000e+00> : vector<8x128xf32>
    %3 = tpu.matmul %1, %2, %cst {dimension_numbers = #tpu.dot_dimension_numbers<[1], [0], [0], [1], [0, 0, 1, 1], [], []>} : vector<8x64xbf16>, vector<64x128xbf16>, vector<8x128xf32> -> vector<8x128xf32>
    %c0_3 = arith.constant 0 : index
    %c0_4 = arith.constant 0 : index
    %4 = vector.load %arg3[%c0_3, %c0_4] : memref<1x128xf32, #tpu.memory_space<vmem>>, vector<1x128xf32>
    %5 = vector.broadcast %4 : vector<1x128xf32> to vector<8x128xf32>
    %6 = arith.addf %3, %5 : vector<8x128xf32>
    %cst_5 = arith.constant 0.000000e+00 : f32
    %7 = vector.broadcast %cst_5 : f32 to vector<8x128xf32>
    %8 = arith.maximumf %6, %7 : vector<8x128xf32>
    %9 = arith.truncf %8 : vector<8x128xf32> to vector<8x128xbf16>
    %c0_6 = arith.constant 0 : index
    %c0_7 = arith.constant 0 : index
    %10 = vector.load %arg4[%c0_6, %c0_7] : memref<128x128xbf16, #tpu.memory_space<vmem>>, vector<128x128xbf16>
    %cst_8 = arith.constant dense<0.000000e+00> : vector<8x128xf32>
    %11 = tpu.matmul %9, %10, %cst_8 {dimension_numbers = #tpu.dot_dimension_numbers<[1], [0], [0], [1], [0, 0, 1, 1], [], []>} : vector<8x128xbf16>, vector<128x128xbf16>, vector<8x128xf32> -> vector<8x128xf32>
    %c0_9 = arith.constant 0 : index
    %c0_10 = arith.constant 0 : index
    %12 = vector.load %arg5[%c0_9, %c0_10] : memref<1x128xf32, #tpu.memory_space<vmem>>, vector<1x128xf32>
    %13 = vector.broadcast %12 : vector<1x128xf32> to vector<8x128xf32>
    %14 = arith.addf %11, %13 : vector<8x128xf32>
    %cst_11 = arith.constant 0.000000e+00 : f32
    %15 = vector.broadcast %cst_11 : f32 to vector<8x128xf32>
    %16 = arith.maximumf %14, %15 : vector<8x128xf32>
    %17 = arith.truncf %16 : vector<8x128xf32> to vector<8x128xbf16>
    %c0_12 = arith.constant 0 : index
    %c0_13 = arith.constant 0 : index
    %18 = vector.load %arg6[%c0_12, %c0_13] : memref<128x128xbf16, #tpu.memory_space<vmem>>, vector<128x128xbf16>
    %cst_14 = arith.constant dense<0.000000e+00> : vector<8x128xf32>
    %19 = tpu.matmul %17, %18, %cst_14 {dimension_numbers = #tpu.dot_dimension_numbers<[1], [0], [0], [1], [0, 0, 1, 1], [], []>} : vector<8x128xbf16>, vector<128x128xbf16>, vector<8x128xf32> -> vector<8x128xf32>
    %c0_15 = arith.constant 0 : index
    %c0_16 = arith.constant 0 : index
    %20 = vector.load %arg7[%c0_15, %c0_16] : memref<1x128xf32, #tpu.memory_space<vmem>>, vector<1x128xf32>
    %21 = vector.broadcast %20 : vector<1x128xf32> to vector<8x128xf32>
    %22 = arith.addf %19, %21 : vector<8x128xf32>
    %23 = math.tanh %22 : vector<8x128xf32>
    %c0_17 = arith.constant 0 : index
    %c0_18 = arith.constant 0 : index
    %24 = vector.load %arg8[%c0_17, %c0_18] : memref<8x128xf32, #tpu.memory_space<vmem>>, vector<8x128xf32>
    tpu.vector_store %arg8[%c0_17, %c0_18], %23 {strides = array<i32>} : memref<8x128xf32, #tpu.memory_space<vmem>>, vector<8x128xf32>,
    return
  }
  func.func @transform_0(%arg0: i32) -> (i32, i32) {
    %c0_i32 = arith.constant 0 : i32
    %c0_i32_0 = arith.constant 0 : i32
    return %arg0, %c0_i32 : i32, i32
  }
  func.func @transform_1(%arg0: i32) -> (i32, i32) {
    %c0_i32 = arith.constant 0 : i32
    %c0_i32_0 = arith.constant 0 : i32
    %c0_i32_1 = arith.constant 0 : i32
    return %c0_i32, %c0_i32_0 : i32, i32
  }
  func.func @transform_2(%arg0: i32) -> (i32, i32) {
    %c0_i32 = arith.constant 0 : i32
    %c0_i32_0 = arith.constant 0 : i32
    %c0_i32_1 = arith.constant 0 : i32
    return %c0_i32, %c0_i32_0 : i32, i32
  }
  func.func @transform_3(%arg0: i32) -> (i32, i32) {
    %c0_i32 = arith.constant 0 : i32
    %c0_i32_0 = arith.constant 0 : i32
    %c0_i32_1 = arith.constant 0 : i32
    return %c0_i32, %c0_i32_0 : i32, i32
  }
  func.func @transform_4(%arg0: i32) -> (i32, i32) {
    %c0_i32 = arith.constant 0 : i32
    %c0_i32_0 = arith.constant 0 : i32
    %c0_i32_1 = arith.constant 0 : i32
    return %c0_i32, %c0_i32_0 : i32, i32
  }
  func.func @transform_5(%arg0: i32) -> (i32, i32) {
    %c0_i32 = arith.constant 0 : i32
    %c0_i32_0 = arith.constant 0 : i32
    %c0_i32_1 = arith.constant 0 : i32
    return %c0_i32, %c0_i32_0 : i32, i32
  }
  func.func @transform_6(%arg0: i32) -> (i32, i32) {
    %c0_i32 = arith.constant 0 : i32
    %c0_i32_0 = arith.constant 0 : i32
    %c0_i32_1 = arith.constant 0 : i32
    return %c0_i32, %c0_i32_0 : i32, i32
  }
  func.func @transform_7(%arg0: i32) -> (i32, i32) {
    %c0_i32 = arith.constant 0 : i32
    %c0_i32_0 = arith.constant 0 : i32
    return %arg0, %c0_i32 : i32, i32
  }
}

</mosaic_0001>

<bundles_post_ra>
// kernel: generator_forward.1
= control target key start
LH: loop header
LB: loop body
LE: loop exit
PB: predicated region body
PF: predicated region fallthrough
CT: control target
= control target key end

     0   :  { %s516_s0 = inlined_call_operand.vmem [shape: f32[8,64], index: 0, kind: input, shape index: {}]   ;;  %s517_s1 = inlined_call_operand.vmem [shape: bf16[64,128], index: 1, kind: input, shape index: {}]   ;;  %s518_s2 = inlined_call_operand.vmem [shape: f32[1,128], index: 2, kind: input, shape index: {}]   ;;  %s519_s3 = inlined_call_operand.vmem [shape: bf16[128,128], index: 3, kind: input, shape index: {}]   ;;  %s520_s4 = inlined_call_operand.vmem [shape: f32[1,128], index: 4, kind: input, shape index: {}]   ;;  %s521_s5 = inlined_call_operand.vmem [shape: bf16[128,128], index: 5, kind: input, shape index: {}]   ;;  %s522_s6 = inlined_call_operand.vmem [shape: f32[1,128], index: 6, kind: input, shape index: {}]   ;;  %s523_s7 = inlined_call_operand.hbm [shape: f32[8,128], index: 7, kind: output, shape index: {}]  }
   0x1   :  { %v351_v0 = vld [vmem:[%s517_s1 + $0x18] sm:$0xff]  ;;  %v350_v2 = vld [vmem:[%s517_s1 + $0x10] sm:$0xff] }
   0x2   :  { %v359_v1 = vld [vmem:[%s519_s3 + $0x38] sm:$0xff]  ;;  %74 = vmatpush.bf16.msra.mxu0 %v351_v0  ;;  %v358_v3 = vld [vmem:[%s519_s3 + $0x30] sm:$0xff] }
   0x3   :  { %153 = vmatpush.bf16.msra.mxu1 %v359_v1 }
   0x4   :  { %12 = vsyncpa [#allocation3], 0  ;;  %v349_v4 = vld [vmem:[%s517_s1 + $0x8] sm:$0xff]  ;;  %v348_v6 = vld [vmem:[%s517_s1] sm:$0xff]  ;;  %vm66_vm0 = vcmask 523264   ;;  %s400_s21 = smov [#allocation2]  }
   0x5   :  { %v357_v5 = vld [vmem:[%s519_s3 + $0x28] sm:$0xff]  ;;  %v28_v7 = vld [vmem:[%s516_s0] sm:$0xff]  ;;  %v355_v10 = vld [vmem:[%s519_s3 + $0x18] sm:$0xff]  ;;  %s258_s23 = sshll.u32 %s523_s7, 4  ;;  %s259_s23 = int_to_ptr.hbm [resolvable:$true] %s258_s23 }
   0x6   :  { %75 = vmatpush.bf16.msra.mxu0 %v350_v2  ;;  %v356_v8 = vld [vmem:[%s519_s3 + $0x20] sm:$0xff]  ;;  %v29_v9 = vpack.c.bf16 %v28_v7, %v28_v7  ;;  %v354_v11 = vld [vmem:[%s519_s3 + $0x10] sm:$0xff]  ;;  %v353_v12 = vld [vmem:[%s519_s3 + $0x8] sm:$0xff] }
   0x7   :  { %154 = vmatpush.bf16.msra.mxu1 %v358_v3  ;;  %v352_v13 = vld [vmem:[%s519_s3] sm:$0xff]  ;;  %v367_v14 = vld [vmem:[%s521_s5 + $0x38] sm:$0xff]  ;;  %v366_v15 = vld [vmem:[%s521_s5 + $0x30] sm:$0xff] }
   0x8   :  { %236 = vmatpush.bf16.msra.mxu2 %v367_v14  ;;  %v365_v16 = vld [vmem:[%s521_s5 + $0x28] sm:$0xff]  ;;  %v364_v17 = vld [vmem:[%s521_s5 + $0x20] sm:$0xff]  ;;  %v363_v18 = vld [vmem:[%s521_s5 + $0x18] sm:$0xff] }
   0x9   :  { %v362_v19 = vld [vmem:[%s521_s5 + $0x10] sm:$0xff]  ;;  %v369_v20 = vld [vmem:[%s518_s2] ss:$0 sm:$0xff]  ;;  %v361_v26 = vld [vmem:[%s521_s5 + $0x8] sm:$0xff] }
   0xa   :  { %76 = vmatpush.bf16.msra.mxu0 %v349_v4  ;;  %v360_v27 = vld [vmem:[%s521_s5] sm:$0xff]  ;;  %s256_s5 = sshll.u32 %s400_s21, 4  ;;  %s257_s5 = int_to_ptr.vmem [resolvable:$true] %s256_s5 }
   0xb   :  { %155 = vmatpush.bf16.msra.mxu1 %v357_v5  ;;  %v370_v28 = vld [vmem:[%s520_s4] ss:$0 sm:$0xff] }
   0xc   :  { %237 = vmatpush.bf16.msra.mxu2 %v366_v15  ;;  %v371_v34 = vld [vmem:[%s522_s6] ss:$0 sm:$0xff] }
   0xe   :  { %77 = vmatpush.bf16.msra.mxu0 %v348_v6 }
   0xf   :  { %156 = vmatpush.bf16.msra.mxu1 %v356_v8 }
  0x10   :  { %238 = vmatpush.bf16.msra.mxu2 %v365_v16 }
  0x11   :  { %283 = vmatmul.msk.bf16.vlgmr.msra.gmra.mxu0 %vm66_vm0, %v29_v9 }
  0x13   :  { %157 = vmatpush.bf16.msra.mxu1 %v355_v10 }
  0x14   :  { %239 = vmatpush.bf16.msra.mxu2 %v364_v17 }
  0x17   :  { %158 = vmatpush.bf16.msra.mxu1 %v354_v11 }
  0x18   :  { %240 = vmatpush.bf16.msra.mxu2 %v363_v18 }
  0x1b   :  { %159 = vmatpush.bf16.msra.mxu1 %v353_v12 }
  0x1c   :  { %241 = vmatpush.bf16.msra.mxu2 %v362_v19 }
  0x1f   :  { %160 = vmatpush.bf16.msra.mxu1 %v352_v13 }
  0x20   :  { %242 = vmatpush.bf16.msra.mxu2 %v361_v26 }
  0x24   :  { %243 = vmatpush.bf16.msra.mxu2 %v360_v27 }
  0x8e   :  { %v79_v21 = vpop.f32.mrf.mxu0 }
  0x8f   :  { %v80_v22 = vadd.f32 %v369_v20, %v79_v21 }
  0x91   :  { %v83_v23 = vmax.f32 %v80_v22, 0.0 }
  0x93   :  { %v84_v24 = vpack.c.bf16 %v83_v23, %v83_v23 }
  0x95   :  { %161 = vmatmul.bf16.vlgmr.msra.gmra.mxu1 %v84_v24 }
  0x96   :  { %v81_v25 = vpop.f32.mrf.mxu0 }
 0x112   :  { %v162_v29 = vpop.f32.mrf.mxu1 }
 0x113   :  { %v163_v30 = vadd.f32 %v370_v28, %v162_v29 }
 0x115   :  { %v166_v31 = vmax.f32 %v163_v30, 0.0 }
 0x117   :  { %v167_v32 = vpack.c.bf16 %v166_v31, %v166_v31 }
 0x119   :  { %244 = vmatmul.bf16.vlgmr.msra.gmra.mxu2 %v167_v32 }
 0x11a   :  { %v164_v33 = vpop.f32.mrf.mxu1 }
 0x19c   :  { %v245_v35 = vpop.f32.mrf.mxu2 }
 0x19d   :  { %v246_v36 = vadd.f32 %v371_v34, %v245_v35 }
 0x19f   :  { %372 = vtanh.f32 %v246_v36 }
 0x1a4   :  { %v247_v37 = vpop.f32.mrf.mxu2 }
 0x1a5   :  { %v373_v38 = vpop.eup %372 }
 0x1a6   :  { %250 = vst [vmem:[#allocation2] sm:$0xff] %v373_v38 }
 0x1a7   :  { %261 = dma.vmem_to_hbm [thread:$0]  %s257_s5, 128, %s259_s23, [#allocation3]  }
 0x1a8   :  { %398 = dma.done.wait [#allocation3], 128  }
 0x1a9   :  { %399 = vsyncadd [#allocation3], 4294967168 }
 0x1aa   :  { %266 = vsyncpa [#allocation3], 1 }

</bundles_post_ra>
